<compile_context>
chip_gen: v6e
topology: v6e:2x2x1
jax: 0.10.0
libtpu: 0.0.40
codegen_flags: <defaults>
</compile_context>

<pallas_src>
import jax
import jax.numpy as jnp
from jax.experimental import pallas as pl
from jax.experimental.pallas import tpu as pltpu

HIDDEN_SIZE = 16
INPUT_SIZE = 1
OUTPUT_SIZE = 1


def _rnn_linear_kernel(x_ref, h0_ref, wih_ref, whh_ref, b_ref,
                       wlin_ref, blin_ref, y_ref, hn_ref):
    """Sequential tanh-RNN over T steps + batched Linear(H->1) epilogue.

    x_ref:    (T, B, I)   time-major input
    h0_ref:   (B, H)      initial hidden state
    wih_ref:  (1, 1, H)   W_ih^T (input_size == 1)
    whh_ref:  (H, H)      W_hh^T
    b_ref:    (1, 1, H)   b_ih + b_hh
    wlin_ref: (1, 1, H)   Linear weight (row)
    blin_ref: (1, 1)      Linear bias
    y_ref:    (T, B)      per-step Linear outputs
    hn_ref:   (B, H)      final hidden state
    """
    T = x_ref.shape[0]

    # Hoist loop-invariant reads into vregs once (W_hh is a single f32 vreg).
    whh = whh_ref[...]          # (H, H)
    wlin = wlin_ref[...]        # (1, 1, H)
    blin = blin_ref[...]        # (1, 1)

    # Input + bias terms don't depend on h: compute them for all T steps in
    # one vectorized op.  (T,B,1) * (1,1,H) + (1,1,H) -> (T,B,H)
    pre = x_ref[...] * wih_ref[...] + b_ref[...]

    # Sequential recurrence; h carried in vregs, loop fully unrolled (T is a
    # compile-time constant) so the LLO scheduler sees across iterations.
    h = h0_ref[...]             # (B, H)
    hs = []
    for t in range(T):
        h = jnp.tanh(pre[t] + jnp.dot(h, whh, preferred_element_type=jnp.float32))
        hs.append(h)
    hn_ref[...] = h

    # Batched Linear(H -> 1) over all timesteps + single output store.
    h_all = jnp.stack(hs, axis=0)                        # (T, B, H), in vregs
    y_ref[...] = jnp.sum(h_all * wlin, axis=-1) + blin   # (T, B)


def rnn_net_forward(x, hidden, params):
    """Equivalent of RNNnet.forward(x, hidden).

    x:      (B, T, 1) float32  (batch_first, like PyTorch)
    hidden: (1, B, H) float32
    returns (out, hidden_out) with out: (1, B*T, 1), hidden_out: (1, B, H)
    """
    B, T, _ = x.shape
    H = HIDDEN_SIZE

    x_tbd = jnp.transpose(x, (1, 0, 2)).astype(jnp.float32)      # (T, B, I)
    h0 = hidden[0].astype(jnp.float32)                           # (B, H)

    wih = params["w_ih"].T.reshape(1, 1, H)                      # (1, 1, H)
    whh_t = params["w_hh"].T                                     # (H, H)
    b = (params["b_ih"] + params["b_hh"]).reshape(1, 1, H)       # (1, 1, H)
    wlin = params["w_lin"].reshape(1, 1, H)                      # (1, 1, H)
    blin = params["b_lin"].reshape(1, 1)                         # (1, 1)

    vmem = pl.BlockSpec(memory_space=pltpu.MemorySpace.VMEM)
    y_tb, h_n = pl.pallas_call(
        _rnn_linear_kernel,
        out_shape=(jax.ShapeDtypeStruct((T, B), jnp.float32),
                   jax.ShapeDtypeStruct((B, H), jnp.float32)),
        in_specs=[vmem] * 7,
        out_specs=(vmem, vmem),
    )(x_tbd, h0, wih, whh_t, b, wlin, blin)

    # PyTorch: out (B,T,H) -> view(-1,H) -> Linear -> unsqueeze(0) => (1, B*T, 1)
    out = jnp.transpose(y_tb).reshape(1, B * T, OUTPUT_SIZE)
    hidden_out = h_n[None]                                       # (1, B, H)
    return out, hidden_out


def _init_params(key):
    """Deterministic PyTorch-style init (U(-1/sqrt(H), 1/sqrt(H)))."""
    H, I = HIDDEN_SIZE, INPUT_SIZE
    k = 1.0 / jnp.sqrt(jnp.float32(H))
    ks = jax.random.split(key, 6)
    u = lambda kk, shape: jax.random.uniform(kk, shape, jnp.float32, -k, k)
    return {
        "w_ih": u(ks[0], (H, I)),
        "w_hh": u(ks[1], (H, H)),
        "b_ih": u(ks[2], (H,)),
        "b_hh": u(ks[3], (H,)),
        "w_lin": u(ks[4], (OUTPUT_SIZE, H)),
        "b_lin": u(ks[5], (OUTPUT_SIZE,)),
    }


def _ref_forward(x, hidden, params):
    """Pure-JAX reference matching torch semantics."""
    B, T, _ = x.shape
    h = hidden[0]
    outs = []
    for t in range(T):
        h = jnp.tanh(x[:, t, :] @ params["w_ih"].T + params["b_ih"]
                     + h @ params["w_hh"].T + params["b_hh"])
        outs.append(h)
    out = jnp.stack(outs, axis=1)                                # (B, T, H)
    out = out.reshape(-1, HIDDEN_SIZE) @ params["w_lin"].T + params["b_lin"]
    return out[None], h[None]


if __name__ == "__main__":
    key = jax.random.PRNGKey(0)
    k_params, k_x = jax.random.split(key)

    B, T = 2, 8
    params = _init_params(k_params)
    x = jax.random.normal(k_x, (B, T, INPUT_SIZE), jnp.float32)
    hidden = jnp.zeros((1, B, HIDDEN_SIZE), jnp.float32)

    out, h_n = jax.jit(rnn_net_forward)(x, hidden, params)
    out = jax.block_until_ready(out)
    h_n = jax.block_until_ready(h_n)

    ref_out, ref_h = _ref_forward(x, hidden, params)
    assert out.shape == (1, B * T, OUTPUT_SIZE), out.shape
    assert h_n.shape == (1, B, HIDDEN_SIZE), h_n.shape
    assert jnp.allclose(out, ref_out, atol=1e-5), "output mismatch vs reference"
    assert jnp.allclose(h_n, ref_h, atol=1e-5), "hidden mismatch vs reference"

    print("KERNEL_OK")
</pallas_src>

<mosaic_0001>
module attributes {stable_mosaic.version = 11 : i64} {
  func.func @_rnn_linear_kernel(%arg0: memref<8x2x1xf32, #tpu.memory_space<vmem>>, %arg1: memref<2x16xf32, #tpu.memory_space<vmem>>, %arg2: memref<1x1x16xf32, #tpu.memory_space<vmem>>, %arg3: memref<16x16xf32, #tpu.memory_space<vmem>>, %arg4: memref<1x1x16xf32, #tpu.memory_space<vmem>>, %arg5: memref<1x1x16xf32, #tpu.memory_space<vmem>>, %arg6: memref<1x1xf32, #tpu.memory_space<vmem>>, %arg7: memref<8x2xf32, #tpu.memory_space<vmem>>, %arg8: memref<2x16xf32, #tpu.memory_space<vmem>>) attributes {dimension_semantics = [], scalar_prefetch = 0 : i64, scratch_operands = 0 : i64, tpu.core_type = #tpu.core_type<tc>} {
    %c0 = arith.constant 0 : index
    %c0_0 = arith.constant 0 : index
    %0 = vector.load %arg3[%c0, %c0_0] : memref<16x16xf32, #tpu.memory_space<vmem>>, vector<16x16xf32>
    %c0_1 = arith.constant 0 : index
    %c0_2 = arith.constant 0 : index
    %c0_3 = arith.constant 0 : index
    %1 = vector.load %arg5[%c0_1, %c0_2, %c0_3] : memref<1x1x16xf32, #tpu.memory_space<vmem>>, vector<1x1x16xf32>
    %c0_4 = arith.constant 0 : index
    %c0_5 = arith.constant 0 : index
    %2 = vector.load %arg6[%c0_4, %c0_5] : memref<1x1xf32, #tpu.memory_space<vmem>>, vector<1x1xf32>
    %c0_6 = arith.constant 0 : index
    %c0_7 = arith.constant 0 : index
    %c0_8 = arith.constant 0 : index
    %3 = vector.load %arg0[%c0_6, %c0_7, %c0_8] : memref<8x2x1xf32, #tpu.memory_space<vmem>>, vector<8x2x1xf32>
    %c0_9 = arith.constant 0 : index
    %c0_10 = arith.constant 0 : index
    %c0_11 = arith.constant 0 : index
    %4 = vector.load %arg2[%c0_9, %c0_10, %c0_11] : memref<1x1x16xf32, #tpu.memory_space<vmem>>, vector<1x1x16xf32>
    %5 = vector.broadcast %3 : vector<8x2x1xf32> to vector<8x2x16xf32>
    %6 = vector.broadcast %4 : vector<1x1x16xf32> to vector<8x2x16xf32>
    %7 = arith.mulf %5, %6 : vector<8x2x16xf32>
    %c0_12 = arith.constant 0 : index
    %c0_13 = arith.constant 0 : index
    %c0_14 = arith.constant 0 : index
    %8 = vector.load %arg4[%c0_12, %c0_13, %c0_14] : memref<1x1x16xf32, #tpu.memory_space<vmem>>, vector<1x1x16xf32>
    %9 = vector.broadcast %8 : vector<1x1x16xf32> to vector<8x2x16xf32>
    %10 = arith.addf %7, %9 : vector<8x2x16xf32>
    %c0_15 = arith.constant 0 : index
    %c0_16 = arith.constant 0 : index
    %11 = vector.load %arg1[%c0_15, %c0_16] : memref<2x16xf32, #tpu.memory_space<vmem>>, vector<2x16xf32>
    %12 = vector.extract_strided_slice %10 {offsets = [0, 0, 0], sizes = [1, 2, 16], strides = [1, 1, 1]} : vector<8x2x16xf32> to vector<1x2x16xf32>
    %13 = vector.shape_cast %12 : vector<1x2x16xf32> to vector<2x16xf32>
    %cst = arith.constant dense<0.000000e+00> : vector<2x16xf32>
    %14 = tpu.matmul %11, %0, %cst {dimension_numbers = #tpu.dot_dimension_numbers<[1], [0], [0], [1], [0, 0, 1, 1], [], []>} : vector<2x16xf32>, vector<16x16xf32>, vector<2x16xf32> -> vector<2x16xf32>
    %15 = arith.addf %13, %14 : vector<2x16xf32>
    %16 = math.tanh %15 : vector<2x16xf32>
    %17 = vector.extract_strided_slice %10 {offsets = [1, 0, 0], sizes = [1, 2, 16], strides = [1, 1, 1]} : vector<8x2x16xf32> to vector<1x2x16xf32>
    %18 = vector.shape_cast %17 : vector<1x2x16xf32> to vector<2x16xf32>
    %cst_17 = arith.constant dense<0.000000e+00> : vector<2x16xf32>
    %19 = tpu.matmul %16, %0, %cst_17 {dimension_numbers = #tpu.dot_dimension_numbers<[1], [0], [0], [1], [0, 0, 1, 1], [], []>} : vector<2x16xf32>, vector<16x16xf32>, vector<2x16xf32> -> vector<2x16xf32>
    %20 = arith.addf %18, %19 : vector<2x16xf32>
    %21 = math.tanh %20 : vector<2x16xf32>
    %22 = vector.extract_strided_slice %10 {offsets = [2, 0, 0], sizes = [1, 2, 16], strides = [1, 1, 1]} : vector<8x2x16xf32> to vector<1x2x16xf32>
    %23 = vector.shape_cast %22 : vector<1x2x16xf32> to vector<2x16xf32>
    %cst_18 = arith.constant dense<0.000000e+00> : vector<2x16xf32>
    %24 = tpu.matmul %21, %0, %cst_18 {dimension_numbers = #tpu.dot_dimension_numbers<[1], [0], [0], [1], [0, 0, 1, 1], [], []>} : vector<2x16xf32>, vector<16x16xf32>, vector<2x16xf32> -> vector<2x16xf32>
    %25 = arith.addf %23, %24 : vector<2x16xf32>
    %26 = math.tanh %25 : vector<2x16xf32>
    %27 = vector.extract_strided_slice %10 {offsets = [3, 0, 0], sizes = [1, 2, 16], strides = [1, 1, 1]} : vector<8x2x16xf32> to vector<1x2x16xf32>
    %28 = vector.shape_cast %27 : vector<1x2x16xf32> to vector<2x16xf32>
    %cst_19 = arith.constant dense<0.000000e+00> : vector<2x16xf32>
    %29 = tpu.matmul %26, %0, %cst_19 {dimension_numbers = #tpu.dot_dimension_numbers<[1], [0], [0], [1], [0, 0, 1, 1], [], []>} : vector<2x16xf32>, vector<16x16xf32>, vector<2x16xf32> -> vector<2x16xf32>
    %30 = arith.addf %28, %29 : vector<2x16xf32>
    %31 = math.tanh %30 : vector<2x16xf32>
    %32 = vector.extract_strided_slice %10 {offsets = [4, 0, 0], sizes = [1, 2, 16], strides = [1, 1, 1]} : vector<8x2x16xf32> to vector<1x2x16xf32>
    %33 = vector.shape_cast %32 : vector<1x2x16xf32> to vector<2x16xf32>
    %cst_20 = arith.constant dense<0.000000e+00> : vector<2x16xf32>
    %34 = tpu.matmul %31, %0, %cst_20 {dimension_numbers = #tpu.dot_dimension_numbers<[1], [0], [0], [1], [0, 0, 1, 1], [], []>} : vector<2x16xf32>, vector<16x16xf32>, vector<2x16xf32> -> vector<2x16xf32>
    %35 = arith.addf %33, %34 : vector<2x16xf32>
    %36 = math.tanh %35 : vector<2x16xf32>
    %37 = vector.extract_strided_slice %10 {offsets = [5, 0, 0], sizes = [1, 2, 16], strides = [1, 1, 1]} : vector<8x2x16xf32> to vector<1x2x16xf32>
    %38 = vector.shape_cast %37 : vector<1x2x16xf32> to vector<2x16xf32>
    %cst_21 = arith.constant dense<0.000000e+00> : vector<2x16xf32>
    %39 = tpu.matmul %36, %0, %cst_21 {dimension_numbers = #tpu.dot_dimension_numbers<[1], [0], [0], [1], [0, 0, 1, 1], [], []>} : vector<2x16xf32>, vector<16x16xf32>, vector<2x16xf32> -> vector<2x16xf32>
    %40 = arith.addf %38, %39 : vector<2x16xf32>
    %41 = math.tanh %40 : vector<2x16xf32>
    %42 = vector.extract_strided_slice %10 {offsets = [6, 0, 0], sizes = [1, 2, 16], strides = [1, 1, 1]} : vector<8x2x16xf32> to vector<1x2x16xf32>
    %43 = vector.shape_cast %42 : vector<1x2x16xf32> to vector<2x16xf32>
    %cst_22 = arith.constant dense<0.000000e+00> : vector<2x16xf32>
    %44 = tpu.matmul %41, %0, %cst_22 {dimension_numbers = #tpu.dot_dimension_numbers<[1], [0], [0], [1], [0, 0, 1, 1], [], []>} : vector<2x16xf32>, vector<16x16xf32>, vector<2x16xf32> -> vector<2x16xf32>
    %45 = arith.addf %43, %44 : vector<2x16xf32>
    %46 = math.tanh %45 : vector<2x16xf32>
    %47 = vector.extract_strided_slice %10 {offsets = [7, 0, 0], sizes = [1, 2, 16], strides = [1, 1, 1]} : vector<8x2x16xf32> to vector<1x2x16xf32>
    %48 = vector.shape_cast %47 : vector<1x2x16xf32> to vector<2x16xf32>
    %cst_23 = arith.constant dense<0.000000e+00> : vector<2x16xf32>
    %49 = tpu.matmul %46, %0, %cst_23 {dimension_numbers = #tpu.dot_dimension_numbers<[1], [0], [0], [1], [0, 0, 1, 1], [], []>} : vector<2x16xf32>, vector<16x16xf32>, vector<2x16xf32> -> vector<2x16xf32>
    %50 = arith.addf %48, %49 : vector<2x16xf32>
    %51 = math.tanh %50 : vector<2x16xf32>
    %c0_24 = arith.constant 0 : index
    %c0_25 = arith.constant 0 : index
    %52 = vector.load %arg8[%c0_24, %c0_25] : memref<2x16xf32, #tpu.memory_space<vmem>>, vector<2x16xf32>
    tpu.vector_store %arg8[%c0_24, %c0_25], %51 {strides = array<i32>} : memref<2x16xf32, #tpu.memory_space<vmem>>, vector<2x16xf32>,
    %53 = vector.shape_cast %16 : vector<2x16xf32> to vector<1x2x16xf32>
    %54 = vector.shape_cast %21 : vector<2x16xf32> to vector<1x2x16xf32>
    %55 = vector.shape_cast %26 : vector<2x16xf32> to vector<1x2x16xf32>
    %56 = vector.shape_cast %31 : vector<2x16xf32> to vector<1x2x16xf32>
    %57 = vector.shape_cast %36 : vector<2x16xf32> to vector<1x2x16xf32>
    %58 = vector.shape_cast %41 : vector<2x16xf32> to vector<1x2x16xf32>
    %59 = vector.shape_cast %46 : vector<2x16xf32> to vector<1x2x16xf32>
    %60 = vector.shape_cast %51 : vector<2x16xf32> to vector<1x2x16xf32>
    %61 = tpu.concatenate %53, %54, %55, %56, %57, %58, %59, %60 in 0 : vector<1x2x16xf32>, vector<1x2x16xf32>, vector<1x2x16xf32>, vector<1x2x16xf32>, vector<1x2x16xf32>, vector<1x2x16xf32>, vector<1x2x16xf32>, vector<1x2x16xf32> -> vector<8x2x16xf32>
    %62 = vector.broadcast %1 : vector<1x1x16xf32> to vector<8x2x16xf32>
    %63 = arith.mulf %61, %62 : vector<8x2x16xf32>
    %cst_26 = arith.constant dense<0.000000e+00> : vector<8x2xf32>
    %64 = vector.multi_reduction <add>, %63, %cst_26 [2] : vector<8x2x16xf32> to vector<8x2xf32>
    %65 = vector.broadcast %2 : vector<1x1xf32> to vector<8x2xf32>
    %66 = arith.addf %64, %65 : vector<8x2xf32>
    %c0_27 = arith.constant 0 : index
    %c0_28 = arith.constant 0 : index
    %67 = vector.load %arg7[%c0_27, %c0_28] : memref<8x2xf32, #tpu.memory_space<vmem>>, vector<8x2xf32>
    tpu.vector_store %arg7[%c0_27, %c0_28], %66 {strides = array<i32>} : memref<8x2xf32, #tpu.memory_space<vmem>>, vector<8x2xf32>,
    return
  }
}

</mosaic_0001>

<bundles_post_ra>
// kernel: rnn_net_forward.1
= control target key start
LH: loop header
LB: loop body
LE: loop exit
PB: predicated region body
PF: predicated region fallthrough
CT: control target
= control target key end

     0   :  { %s1184_s0 = inlined_call_operand.vmem [shape: f32[8,2,1], index: 0, kind: input, shape index: {}]   ;;  %s1185_s1 = inlined_call_operand.vmem [shape: f32[2,16], index: 1, kind: input, shape index: {}]   ;;  %s1186_s2 = inlined_call_operand.vmem [shape: f32[1,1,16], index: 2, kind: input, shape index: {}]   ;;  %s1187_s3 = inlined_call_operand.vmem [shape: f32[16,16], index: 3, kind: input, shape index: {}]   ;;  %s1188_s4 = inlined_call_operand.vmem [shape: f32[1,1,16], index: 4, kind: input, shape index: {}]   ;;  %s1189_s5 = inlined_call_operand.vmem [shape: f32[1,1,16], index: 5, kind: input, shape index: {}]   ;;  %s1190_s6 = inlined_call_operand.<no memory space> [shape: f32[1,1], index: 6, kind: input, shape index: {}]   ;;  %s1191_s7 = inlined_call_operand.vmem [shape: f32[8,2], index: 7, kind: output, shape index: {0}]   ;;  %s1192_s8 = inlined_call_operand.hbm [shape: f32[2,16], index: 8, kind: output, shape index: {1}]  }
   0x1   :  { %v14_v0 = vstv %s1190_s6 }
   0x2   :  { %15 = vst [vmem:[#allocation2] sm:$0x1] %v14_v0 }
   0x3   :  { %v1040_v1 = vld [vmem:[%s1187_s3 + $0x8] sm:$0xff]  ;;  %v985_v2 = vmov 0.0   ;;  %v1046_v3 = vld [vmem:[%s1187_s3] sm:$0xff]  ;;  %vm986_vm0 = vmmov 0   ;;  %vm114_vm1 = vcmask 130048   ;;  %v987_v6 = vmov 0  }
   0x4   :  { %885 = vmatprep.subr.mxu0 %v985_v2  ;;  %889 = vmatprep.mubr.msk.f32.mxu0 %vm986_vm0, %v985_v2  ;;  %v35_v4 = vld [vmem:[%s1184_s0] sm:$0x3] }
   0x5   :  { %886 = vmatpush3.msra.mxu0 %v1040_v1  ;;  %v113_v5 = vld [vmem:[%s1185_s1] sm:$0x3]  ;;  %945 = vset.pattern.permute.xlu0 %v987_v6 }
   0x6   :  { %887 = vmatprep.subr.mxu0 %v985_v2  ;;  %46 = vperm.xlu0 %945, %v35_v4  }
   0x7   :  { %16 = vsyncpa [#allocation4], 0  ;;  %888 = vmatpush3.msra.mxu0 %v1046_v3  ;;  %v36_v7 = vld [vmem:[%s1184_s0 + $0x2] sm:$0x3]  ;;  %892 = vmatprep.subr.mxu1 %v985_v2  ;;  %v39_v8 = vld [vmem:[%s1184_s0 + $0x8] sm:$0x3] }
   0x8   :  { %890 = vmatmul.mubr.msk.f32.vlgmr.msra.gmra.mxu0 %vm114_vm1, %v113_v5  ;;  %893 = vmatpush3.msra.mxu1 %v1040_v1  ;;  %v41_v9 = vld [vmem:[%s1184_s0 + $0xc] sm:$0x3]  ;;  %v1086_v10 = vld [vmem:[%s1186_s2] ss:$0 sm:$0xff]  ;;  %vm715_vm2 = vcmask 123904  }
   0x9   :  { %894 = vmatprep.subr.mxu1 %v985_v2  ;;  %896 = vmatprep.mubr.msk.f32.mxu1 %vm986_vm0, %v985_v2  ;;  %v1092_v13 = vld [vmem:[%s1188_s4] ss:$0 sm:$0xff]  ;;  %v37_v22 = vld [vmem:[%s1184_s0 + $0x4] sm:$0x3]  ;;  %v38_v23 = vld [vmem:[%s1184_s0 + $0x6] sm:$0x3] }
   0xa   :  { %51 = vperm.xlu0 %945, %v36_v7   ;;  %895 = vmatpush3.msra.mxu1 %v1046_v3  ;;  %v1098_v18 = vld [vmem:[%s1189_s5] ss:$0 sm:$0xff]  ;;  %v40_v24 = vld [vmem:[%s1184_s0 + $0xa] sm:$0x3]  ;;  %v42_v25 = vld [vmem:[%s1184_s0 + $0xe] sm:$0x3] }
   0xb   :  { %946 = vset.pattern.permute.xlu1 %v987_v6  ;;  %899 = vmatprep.subr.mxu0 %v985_v2  ;;  %s988_s0 = smov [#allocation3]  }
   0xc   :  { %900 = vmatpush3.msra.mxu0 %v1040_v1  ;;  %903 = vmatprep.mubr.msk.f32.mxu0 %vm986_vm0, %v985_v2  ;;  %s839_s29 = sshll.u32 %s988_s0, 4  ;;  %s840_s29 = int_to_ptr.vmem [resolvable:$true] %s839_s29 }
   0xd   :  { %901 = vmatprep.subr.mxu0 %v985_v2  ;;  %906 = vmatprep.subr.mxu1 %v985_v2  ;;  %s963_s30 = scalar_lea.vmem %s840_s29, 32  ;;  %p968_p1 = scmp.lt.s32.totalorder %s840_s29, %s840_s29 }
   0xe   :  { %66 = vperm.xlu0 %945, %v39_v8   ;;  %902 = vmatpush3.msra.mxu0 %v1046_v3  ;;  %p964_p0 = scmp.ne.s32.totalorder %s840_s29, %s963_s30  ;;  %p969_p2 = scmp.lt.s32.totalorder %s963_s30, %s963_s30 }
   0xf   :  { %913 = vmatprep.subr.mxu0 %v985_v2  ;;  %56 = vperm.xlu1 %946, %v37_v22  }
  0x10   :  { %p970_p3 = por %p969_p2, %p968_p1 }
  0x12   :  { %76 = vperm.xlu0 %945, %v41_v9   ;;  %p971_p4 = pnand %p970_p3, %p964_p0 }
  0x13   :  { %61 = vperm.xlu1 %946, %v38_v23  }
  0x17   :  { %71 = vperm.xlu1 %946, %v40_v24  }
  0x1b   :  { %81 = vperm.xlu1 %946, %v42_v25  }
  0x81   :  { %v47_v11 = vpop.permute.xlu0 %46 }
  0x82   :  { %v90_v12 = vmul.f32 %v1086_v10, %v47_v11 }
  0x84   :  { %v105_v14 = vadd.f32 %v1092_v13, %v90_v12 }
  0x85   :  { %v52_v26 = vpop.permute.xlu0 %51 }
  0x86   :  { %v91_v27 = vmul.f32 %v1086_v10, %v52_v26 }
  0x88   :  { %v106_v28 = vadd.f32 %v1092_v13, %v91_v27 }
  0x89   :  { %v67_v53 = vpop.permute.xlu0 %66 }
  0x8a   :  { %v57_v35 = vpop.permute.xlu1 %56  ;;  %v94_v54 = vmul.f32 %v1086_v10, %v67_v53 }
  0x8b   :  { %v92_v36 = vmul.f32 %v1086_v10, %v57_v35 }
  0x8c   :  { %v109_v55 = vadd.f32 %v1092_v13, %v94_v54 }
  0x8d   :  { %v107_v37 = vadd.f32 %v1092_v13, %v92_v36 }
  0x8e   :  { %v62_v44 = vpop.permute.xlu1 %61 }
  0x8f   :  { %v93_v45 = vmul.f32 %v1086_v10, %v62_v44 }
  0x91   :  { %v108_v46 = vadd.f32 %v1092_v13, %v93_v45 }
  0x92   :  { %v72_v62 = vpop.permute.xlu1 %71 }
  0x93   :  { %v95_v63 = vmul.f32 %v1086_v10, %v72_v62 }
  0x95   :  { %v110_v0 = vadd.f32 %v1092_v13, %v95_v63 }
  0xc8   :  { %v184_v15 = vpop.f32.mrf.mxu0 }
  0xc9   :  { %v188_v16 = vadd.f32 %v184_v15, %v105_v14 }
  0xca   :  { %v891_v17 = vpop.f32.mrf.mxu0 }
  0xcb   :  { %947 = vtanh.f32 %v188_v16 }
  0xd8   :  { %v948_v19 = vpop.eup %947 }
  0xd9   :  { %897 = vmatmul.mubr.msk.f32.vlgmr.msra.gmra.mxu1 %vm114_vm1, %v948_v19  ;;  %v723_v20 = vmul.f32 %v948_v19, %v1098_v18  ;;  %v860_v19 = vld [vmem:[#allocation2] ss:$0 sm:$0xff] }
  0xda   :  { %907 = vmatpush3.msra.mxu1 %v1040_v1  ;;  %910 = vmatprep.mubr.msk.f32.mxu1 %vm986_vm0, %v985_v2 }
  0xdb   :  { %v731_v21 = vsel %vm715_vm2, %v723_v20, 0.0  ;;  %908 = vmatprep.subr.mxu1 %v985_v2  ;;  %v82_v20 = vpop.permute.xlu1 %81 }
  0xdc   :  { %732 = vadd.xlane.f32.xlu0 %v731_v21  ;;  %909 = vmatpush3.msra.mxu1 %v1046_v3  ;;  %v97_v21 = vmul.f32 %v1086_v10, %v82_v20 }
  0xdd   :  { %920 = vmatprep.subr.mxu1 %v985_v2 }
  0xde   :  { %v112_v22 = vadd.f32 %v1092_v13, %v97_v21 }
 0x199   :  { %v259_v29 = vpop.f32.mrf.mxu1 }
 0x19a   :  { %v263_v30 = vadd.f32 %v259_v29, %v106_v28 }
 0x19b   :  { %v898_v31 = vpop.f32.mrf.mxu1 }
 0x19c   :  { %949 = vtanh.f32 %v263_v30 }
 0x1a9   :  { %v950_v32 = vpop.eup %949 }
 0x1aa   :  { %904 = vmatmul.mubr.msk.f32.vlgmr.msra.gmra.mxu0 %vm114_vm1, %v950_v32  ;;  %v724_v33 = vmul.f32 %v950_v32, %v1098_v18 }
 0x1ab   :  { %914 = vmatpush3.msra.mxu0 %v1040_v1  ;;  %917 = vmatprep.mubr.msk.f32.mxu0 %vm986_vm0, %v985_v2 }
 0x1ac   :  { %v734_v34 = vsel %vm715_vm2, %v724_v33, 0.0  ;;  %915 = vmatprep.subr.mxu0 %v985_v2 }
 0x1ad   :  { %735 = vadd.xlane.f32.xlu1 %v734_v34  ;;  %916 = vmatpush3.msra.mxu0 %v1046_v3 }
 0x1ae   :  { %927 = vmatprep.subr.mxu0 %v985_v2 }
 0x26a   :  { %v334_v38 = vpop.f32.mrf.mxu0 }
 0x26b   :  { %v338_v39 = vadd.f32 %v334_v38, %v107_v37 }
 0x26c   :  { %v905_v40 = vpop.f32.mrf.mxu0 }
 0x26d   :  { %951 = vtanh.f32 %v338_v39 }
 0x27a   :  { %v952_v41 = vpop.eup %951 }
 0x27b   :  { %911 = vmatmul.mubr.msk.f32.vlgmr.msra.gmra.mxu1 %vm114_vm1, %v952_v41  ;;  %v725_v42 = vmul.f32 %v952_v41, %v1098_v18 }
 0x27c   :  { %921 = vmatpush3.msra.mxu1 %v1040_v1  ;;  %924 = vmatprep.mubr.msk.f32.mxu1 %vm986_vm0, %v985_v2 }
 0x27d   :  { %v737_v43 = vsel %vm715_vm2, %v725_v42, 0.0  ;;  %922 = vmatprep.subr.mxu1 %v985_v2 }
 0x27e   :  { %738 = vadd.xlane.f32.xlu0 %v737_v43  ;;  %923 = vmatpush3.msra.mxu1 %v1046_v3 }
 0x27f   :  { %934 = vmatprep.subr.mxu1 %v985_v2 }
 0x33b   :  { %v409_v47 = vpop.f32.mrf.mxu1 }
 0x33c   :  { %v413_v48 = vadd.f32 %v409_v47, %v108_v46 }
 0x33d   :  { %v912_v49 = vpop.f32.mrf.mxu1 }
 0x33e   :  { %953 = vtanh.f32 %v413_v48 }
 0x34b   :  { %v954_v50 = vpop.eup %953 }
 0x34c   :  { %918 = vmatmul.mubr.msk.f32.vlgmr.msra.gmra.mxu0 %vm114_vm1, %v954_v50  ;;  %v726_v51 = vmul.f32 %v954_v50, %v1098_v18 }
 0x34d   :  { %928 = vmatpush3.msra.mxu0 %v1040_v1  ;;  %931 = vmatprep.mubr.msk.f32.mxu0 %vm986_vm0, %v985_v2 }
 0x34e   :  { %v740_v52 = vsel %vm715_vm2, %v726_v51, 0.0  ;;  %929 = vmatprep.subr.mxu0 %v985_v2 }
 0x34f   :  { %741 = vadd.xlane.f32.xlu0 %v740_v52  ;;  %930 = vmatpush3.msra.mxu0 %v1046_v3 }
 0x40c   :  { %v484_v56 = vpop.f32.mrf.mxu0 }
 0x40d   :  { %v488_v57 = vadd.f32 %v484_v56, %v109_v55 }
 0x40e   :  { %v919_v58 = vpop.f32.mrf.mxu0 }
 0x40f   :  { %955 = vtanh.f32 %v488_v57 }
 0x41c   :  { %v956_v59 = vpop.eup %955 }
 0x41d   :  { %925 = vmatmul.mubr.msk.f32.vlgmr.msra.gmra.mxu1 %vm114_vm1, %v956_v59  ;;  %v727_v60 = vmul.f32 %v956_v59, %v1098_v18 }
 0x41e   :  { %935 = vmatpush3.msra.mxu1 %v1040_v1  ;;  %938 = vmatprep.mubr.msk.f32.mxu1 %vm986_vm0, %v985_v2 }
 0x41f   :  { %v743_v61 = vsel %vm715_vm2, %v727_v60, 0.0  ;;  %936 = vmatprep.subr.mxu1 %v985_v2  ;;  %v77_v2 = vpop.permute.xlu0 %76 }
 0x420   :  { %744 = vadd.xlane.f32.xlu1 %v743_v61  ;;  %937 = vmatpush3.msra.mxu1 %v1046_v3  ;;  %v96_v3 = vmul.f32 %v1086_v10, %v77_v2 }
 0x422   :  { %v111_v9 = vadd.f32 %v1092_v13, %v96_v3 }
 0x4dd   :  { %v559_v4 = vpop.f32.mrf.mxu1 }
 0x4de   :  { %v563_v5 = vadd.f32 %v559_v4, %v110_v0 }
 0x4df   :  { %v926_v6 = vpop.f32.mrf.mxu1 }
 0x4e0   :  { %957 = vtanh.f32 %v563_v5 }
 0x4ed   :  { %v958_v1 = vpop.eup %957 }
 0x4ee   :  { %932 = vmatmul.mubr.msk.f32.vlgmr.msra.gmra.mxu0 %vm114_vm1, %v958_v1  ;;  %v728_v7 = vmul.f32 %v958_v1, %v1098_v18 }
 0x4f0   :  { %v746_v8 = vsel %vm715_vm2, %v728_v7, 0.0 }
 0x4f1   :  { %747 = vadd.xlane.f32.xlu0 %v746_v8 }
 0x5ae   :  { %v634_v11 = vpop.f32.mrf.mxu0 }
 0x5af   :  { %v638_v12 = vadd.f32 %v634_v11, %v111_v9 }
 0x5b0   :  { %v933_v14 = vpop.f32.mrf.mxu0 }
 0x5b1   :  { %959 = vtanh.f32 %v638_v12 }
 0x5be   :  { %v960_v15 = vpop.eup %959 }
 0x5bf   :  { %939 = vmatmul.mubr.msk.f32.vlgmr.msra.gmra.mxu1 %vm114_vm1, %v960_v15  ;;  %v729_v16 = vmul.f32 %v960_v15, %v1098_v18 }
 0x5c1   :  { %v749_v17 = vsel %vm715_vm2, %v729_v16, 0.0 }
 0x5c2   :  { %750 = vadd.xlane.f32.xlu1 %v749_v17 }
 0x5d3   :  { %761 = vperm.xlu1 %946, %v860_v19  }
 0x67f   :  { %v709_v23 = vpop.f32.mrf.mxu1 }
 0x680   :  { %v713_v24 = vadd.f32 %v709_v23, %v112_v22 }
 0x681   :  { %v940_v25 = vpop.f32.mrf.mxu1 }
 0x682   :  { %961 = vtanh.f32 %v713_v24 }
 0x68f   :  { %v962_v26 = vpop.eup %961 }
 0x690   :  { %716 = vst.msk [vmem:[#allocation3] sm:$0x3] %vm715_vm2, %v962_v26  ;;  %v730_v27 = vmul.f32 %v962_v26, %v1098_v18 }
 0x692   :  { %v752_v28 = vsel %vm715_vm2, %v730_v27, 0.0 }
 0x693   :  { %753 = vadd.xlane.f32.xlu0 %v752_v28 }
 0x694   :  { %974 = shalt.err (!%p971_p4)
}
 0x695   :  { %842 = dma.vmem_to_hbm [thread:$0]  %s840_s29, 32, %s1192_s8, [#allocation4]   ;;  %v736_v10 = vpop.xlane.xlu1 %735  ;;  %v780_v29 = vlaneseq  ;;  %v733_v33 = vpop.xlane.xlu0 %732  ;;  %vm814_vm3 = vcmask 1041409   ;;  %vm816_vm4 = vcmask 1042434   ;;  %vm818_vm5 = vcmask 1043459  }
 0x696   :  { %vm820_vm6 = vcmask 1044484   ;;  %vm822_vm7 = vcmask 1045509   ;;  %vm824_vm8 = vcmask 1046534   ;;  %vm826_vm9 = vcmask 1047559  }
 0x697   :  { %v781_v30 = vand.u32 127, %v780_v29  ;;  %v783_v31 = vshrl.u32 %v780_v29, 7  ;;  %vm829_vm10 = vcmask 15360  }
 0x699   :  { %v745_v13 = vpop.xlane.xlu1 %744  ;;  %v784_v34 = vsub.s32 %v781_v30, %v783_v31  ;;  %v739_v37 = vpop.xlane.xlu0 %738 }
 0x69d   :  { %v751_v18 = vpop.xlane.xlu1 %750  ;;  %v742_v41 = vpop.xlane.xlu0 %741 }
 0x6a1   :  { %v762_v32 = vpop.permute.xlu1 %761  ;;  %v748_v48 = vpop.xlane.xlu0 %747 }
 0x6a2   :  { %v764_v35 = vadd.f32 %v762_v32, %v733_v33  ;;  %v765_v36 = vadd.f32 %v762_v32, %v736_v10  ;;  %v766_v38 = vadd.f32 %v762_v32, %v739_v37  ;;  %v767_v43 = vadd.f32 %v762_v32, %v742_v41 }
 0x6a3   :  { %v768_v45 = vadd.f32 %v762_v32, %v745_v13  ;;  %v769_v49 = vadd.f32 %v762_v32, %v748_v48  ;;  %v770_v52 = vadd.f32 %v762_v32, %v751_v18 }
 0x6a4   :  { %v785_v39 = vrot.slane %v764_v35, %v784_v34  ;;  %v789_v40 = vrot.slane %v765_v36, %v784_v34  ;;  %v793_v42 = vrot.slane %v766_v38, %v784_v34  ;;  %v797_v47 = vrot.slane %v767_v43, %v784_v34 }
 0x6a5   :  { %v801_v51 = vrot.slane %v768_v45, %v784_v34  ;;  %v805_v54 = vrot.slane %v769_v49, %v784_v34  ;;  %v809_v58 = vrot.slane %v770_v52, %v784_v34 }
 0x6a6   :  { %v815_v44 = vsel %vm814_vm3, %v789_v40, %v785_v39 }
 0x6a7   :  { %v817_v46 = vsel %vm816_vm4, %v793_v42, %v815_v44 }
 0x6a8   :  { %v819_v50 = vsel %vm818_vm5, %v797_v47, %v817_v46 }
 0x6a9   :  { %v821_v53 = vsel %vm820_vm6, %v801_v51, %v819_v50 }
 0x6aa   :  { %v823_v56 = vsel %vm822_vm7, %v805_v54, %v821_v53 }
 0x6ab   :  { %v825_v60 = vsel %vm824_vm8, %v809_v58, %v823_v56 }
 0x71c   :  { %v754_v55 = vpop.xlane.xlu0 %753 }
 0x71d   :  { %v771_v57 = vadd.f32 %v762_v32, %v754_v55 }
 0x71f   :  { %v813_v59 = vrot.slane %v771_v57, %v784_v34 }
 0x721   :  { %v827_v61 = vsel %vm826_vm9, %v813_v59, %v825_v60 }
 0x722   :  { %830 = vst.msk [vmem:[%s1191_s7] sm:$0xff] %vm829_vm10, %v827_v61 }
 0x723   :  { %983 = dma.done.wait [#allocation4], 32  }
 0x724   :  { %984 = vsyncadd [#allocation4], 4294967264 }
 0x725   :  { %848 = vsyncpa [#allocation4], 1 }

</bundles_post_ra>
